<compile_context>
chip_gen: v7x
topology: tpu7x:2x2x1
jax: 0.10.0
libtpu: 0.0.40
codegen_flags: <defaults>
</compile_context>

<pallas_src>
import functools

import jax
import jax.numpy as jnp
from jax.experimental import pallas as pl
from jax.experimental.pallas import tpu as pltpu


# ----------------------------------------------------------------------------
# Kernels
# ----------------------------------------------------------------------------
def _sage2_fused_kernel(a_ref, x_ref, w1_ref, b1_ref, w2_ref, b2_ref, o_ref,
                        *, m1, m2, reassoc1, reassoc2):
    """Both SAGE layers + ELU in one VMEM-resident body (bf16 MXU, f32 accum)."""
    a = a_ref[...]          # (Np, Np)  bf16 row-normalized adjacency
    x = x_ref[...]          # (Np, Dp)  bf16 node features
    bf = x.dtype

    def sage(xx, w_ref, b_ref, m, reassoc):
        if reassoc:
            # W = [W_self | W_neigh]  (K, 2m): project first (cheap K matmul),
            # then aggregate only m columns with the O(N^2) matmul.
            proj = jnp.dot(xx, w_ref[...], preferred_element_type=jnp.float32)
            y = proj[:, :m] + jnp.dot(a, proj[:, m:].astype(bf),
                                      preferred_element_type=jnp.float32)
        else:
            # W = [W_self ; W_neigh]  (2K, m): aggregate first, then ONE fused
            # K = 2*d matmul covering both projections.
            neigh = jnp.dot(a, xx, preferred_element_type=jnp.float32).astype(bf)
            y = jnp.dot(jnp.concatenate([xx, neigh], axis=1), w_ref[...],
                        preferred_element_type=jnp.float32)
        return y + b_ref[...]                                   # f32

    # ---- layer 1 + ELU (f32 epilogue; dropout = identity at inference) ------
    h = sage(x, w1_ref, b1_ref, m1, reassoc1)
    h = jnp.where(h > 0.0, h, jnp.exp(h) - 1.0)                 # ELU
    hb = h.astype(bf)

    # ---- layer 2: is_out_layer=True -> no activation, no dropout ------------
    out = sage(hb, w2_ref, b2_ref, m2, reassoc2)
    o_ref[...] = out.astype(o_ref.dtype)


def _rowtiled_layer_kernel(a_ref, xr_ref, xf_ref, w_ref, b_ref, o_ref,
                           *, apply_elu):
    """One SAGE layer on a row block of A / X_self, with full X for aggregation."""
    bf = xf_ref.dtype
    neigh = jnp.dot(a_ref[...], xf_ref[...],
                    preferred_element_type=jnp.float32).astype(bf)
    y = jnp.dot(jnp.concatenate([xr_ref[...], neigh], axis=1), w_ref[...],
                preferred_element_type=jnp.float32) + b_ref[...]
    if apply_elu:
        y = jnp.where(y > 0.0, y, jnp.exp(y) - 1.0)
    o_ref[...] = y.astype(o_ref.dtype)


# ----------------------------------------------------------------------------
# Wrapper helpers
# ----------------------------------------------------------------------------
def _rup(v, m):
    return ((v + m - 1) // m) * m


def _pad2(x, rows, cols):
    pr, pc = rows - x.shape[0], cols - x.shape[1]
    if pr == 0 and pc == 0:
        return x                                   # no-op: no extra HBM pass
    return jnp.pad(x, ((0, pr), (0, pc)))


def _prep_layer(layer, k_p, m_p, reassoc, bf):
    """Pad + concatenate a layer's weights into the single-matmul layout."""
    ws = _pad2(layer["w_self"], k_p, m_p)
    wn = _pad2(layer["w_neigh"], k_p, m_p)
    if reassoc:
        w = jnp.concatenate([ws, wn], axis=1).astype(bf)    # (K_p, 2*M_p)
    else:
        w = jnp.concatenate([ws, wn], axis=0).astype(bf)    # (2*K_p, M_p)
    b = _pad2(layer["b"][None, :], 1, m_p).astype(jnp.float32)
    return w, b


def _vmem_limit_bytes(operands, intermediate_bytes):
    """Explicit VMEM budget: 2x operands (double-buffer headroom) + temps.

    Floor 32 MiB (v5e default scoped limit is only 16 MiB); cap 64 MiB so the
    request never exceeds v7x's physical VMEM.
    """
    op_bytes = sum(a.size * a.dtype.itemsize for a in operands)
    est = 2 * op_bytes + intermediate_bytes
    return int(min(64 << 20, max(32 << 20, est)))


def _rowtiled_sage_layer(a_b, x_b, w_cat, b_row, m_p, out_dtype, apply_elu,
                         row_block):
    n_p, d_p = x_b.shape
    inter = 4 * row_block * (2 * d_p + 2 * m_p)
    vmem_limit = _vmem_limit_bytes([a_b, x_b, x_b, w_cat, b_row], inter)
    kern = functools.partial(_rowtiled_layer_kernel, apply_elu=apply_elu)
    return pl.pallas_call(
        kern,
        out_shape=jax.ShapeDtypeStruct((n_p, m_p), out_dtype),
        grid_spec=pltpu.PrefetchScalarGridSpec(
            num_scalar_prefetch=0,
            grid=(n_p // row_block,),
            in_specs=[
                pl.BlockSpec((row_block, n_p), lambda i: (i, 0)),   # A row block
                pl.BlockSpec((row_block, d_p), lambda i: (i, 0)),   # X rows (self)
                pl.BlockSpec((n_p, d_p), lambda i: (0, 0)),         # X full (agg)
                pl.BlockSpec(w_cat.shape, lambda i: (0, 0)),        # weights
                pl.BlockSpec(b_row.shape, lambda i: (0, 0)),        # bias
            ],
            out_specs=pl.BlockSpec((row_block, m_p), lambda i: (i, 0)),
        ),
        compiler_params=pltpu.CompilerParams(
            dimension_semantics=("parallel",),      # shards row blocks over TCs
            vmem_limit_bytes=vmem_limit,
        ),
    )(a_b, x_b, x_b, w_cat, b_row)


# ----------------------------------------------------------------------------
# Public forward
# ----------------------------------------------------------------------------
def two_layer_graphsage(a_mean, x, params, *, row_block=None):
    """Forward of TwoLayerGraphSage (mean aggregator, Elu, is_out_layer=True).

    a_mean: (N, N) row-normalized adjacency, ideally already bf16.
    row_block=None -> fully-fused single pallas_call (small/medium graphs).
    row_block=int  -> two row-tiled pallas_calls with a "parallel" grid
                      (v7x two-TC utilization / graphs too big for VMEM).
    """
    n, d_in = x.shape
    h_dim = params["l1"]["w_self"].shape[1]
    o_dim = params["l2"]["w_self"].shape[1]

    if row_block is not None:
        assert row_block % 16 == 0, "row_block must be a bf16 sublane multiple"
    n_p = _rup(n, 16 if row_block is None else row_block)   # bf16 tile is (16,128)
    d_p = _rup(d_in, 128)
    h_p = _rup(h_dim, 128)
    o_p = _rup(o_dim, 128)

    bf = jnp.bfloat16
    # A should arrive in bf16 (build_mean_adjacency emits bf16) so this astype
    # and pad are no-ops for aligned inputs -> no extra N^2 HBM pass.
    a_b = _pad2(a_mean, n_p, n_p).astype(bf)
    x_b = _pad2(x, n_p, d_p).astype(bf)

    if row_block is None:
        # --------------------- fused single-call path ------------------------
        reassoc1 = d_p > h_p          # A @ (X @ Wn) cheaper when d_in >> hidden
        reassoc2 = h_p > o_p
        w1, b1 = _prep_layer(params["l1"], d_p, h_p, reassoc1, bf)
        w2, b2 = _prep_layer(params["l2"], h_p, o_p, reassoc2, bf)

        inter = 4 * n_p * (2 * d_p + 3 * h_p + o_p)
        vmem_limit = _vmem_limit_bytes([a_b, x_b, w1, b1, w2, b2], inter
                                       + 4 * n_p * o_p)
        kern = functools.partial(_sage2_fused_kernel, m1=h_p, m2=o_p,
                                 reassoc1=reassoc1, reassoc2=reassoc2)
        vspec = pl.BlockSpec(memory_space=pltpu.MemorySpace.VMEM)
        out_p = pl.pallas_call(
            kern,
            out_shape=jax.ShapeDtypeStruct((n_p, o_p), jnp.float32),
            in_specs=[vspec] * 6,
            out_specs=vspec,
            compiler_params=pltpu.CompilerParams(vmem_limit_bytes=vmem_limit),
        )(a_b, x_b, w1, b1, w2, b2)
        return out_p[:n, :o_dim]

    # ----------------------- row-tiled two-call path -------------------------
    w1, b1 = _prep_layer(params["l1"], d_p, h_p, False, bf)
    w2, b2 = _prep_layer(params["l2"], h_p, o_p, False, bf)
    h_b = _rowtiled_sage_layer(a_b, x_b, w1, b1, h_p, bf, True, row_block)
    out_p = _rowtiled_sage_layer(a_b, h_b, w2, b2, o_p, jnp.float32, False,
                                 row_block)
    return out_p[:n, :o_dim]


# ----------------------------------------------------------------------------
# Pure-JAX f32 reference (loose sanity check against the bf16 kernel).
# ----------------------------------------------------------------------------
def _ref_forward(a_mean_f32, x, params):
    def sage(p, xx):
        return xx @ p["w_self"] + (a_mean_f32 @ xx) @ p["w_neigh"] + p["b"]
    h = sage(params["l1"], x)
    h = jnp.where(h > 0.0, h, jnp.exp(h) - 1.0)   # ELU
    return sage(params["l2"], h)


# ----------------------------------------------------------------------------
# Deterministic parameter / input construction
# ----------------------------------------------------------------------------
def _sage_layer_params(key, d_in, d_out):
    k1, k2, k3 = jax.random.split(key, 3)
    scale = 1.0 / jnp.sqrt(jnp.float32(d_in))
    return {
        "w_self": jax.random.uniform(k1, (d_in, d_out), jnp.float32, -scale, scale),
        "w_neigh": jax.random.uniform(k2, (d_in, d_out), jnp.float32, -scale, scale),
        "b": jax.random.uniform(k3, (d_out,), jnp.float32, -scale, scale),
    }


def build_params(key, in_features, hidden_features, out_features):
    k1, k2 = jax.random.split(key)
    return {
        "l1": _sage_layer_params(k1, in_features, hidden_features),
        "l2": _sage_layer_params(k2, hidden_features, out_features),
    }


def build_mean_adjacency(key, n, p=0.1):
    # Random symmetric adjacency (no self loops), row-normalized by in-degree
    # (clamped at 1) == DGL SAGEConv 'mean' aggregation as a dense matmul.
    # Emitted directly in bf16 so the kernel wrapper never re-reads/re-writes
    # the O(N^2) adjacency just to cast it.
    mask = (jax.random.uniform(key, (n, n)) < p).astype(jnp.float32)
    adj = jnp.maximum(mask, mask.T) * (1.0 - jnp.eye(n, dtype=jnp.float32))
    deg = jnp.sum(adj, axis=1, keepdims=True)
    return (adj / jnp.maximum(deg, 1.0)).astype(jnp.bfloat16)


if __name__ == "__main__":
    root = jax.random.PRNGKey(0)

    def run_case(key, n, d_in, d_h, d_out, row_block=None):
        k_adj, k_x, k_p = jax.random.split(key, 3)
        a_mean = build_mean_adjacency(k_adj, n)                 # bf16
        x = jax.random.normal(k_x, (n, d_in), jnp.float32)
        params = build_params(k_p, d_in, d_h, d_out)
        fwd = jax.jit(functools.partial(two_layer_graphsage, row_block=row_block))
        out = fwd(a_mean, x, params)
        jax.block_until_ready(out)
        assert out.shape == (n, d_out), out.shape
        ref = _ref_forward(a_mean.astype(jnp.float32), x, params)
        err = float(jnp.max(jnp.abs(out - ref)))
        assert err < 0.2, f"max abs error vs f32 reference too large: {err}"

    k1, k2, k3 = jax.random.split(root, 3)
    # 1) Fused single-call kernel; d_p == h_p -> fused K=2*d concat-matmul path.
    run_case(k1, 128, 64, 32, 32)
    # 2) Fused kernel with padded d_in > padded hidden -> reassociated
    #    A @ (X @ W_neigh) path.
    run_case(k2, 128, 256, 32, 32)
    # 3) Row-tiled two-call "parallel"-grid path (v7x two-TC / large-N form).
    run_case(k3, 128, 64, 32, 32, row_block=64)

    print("KERNEL_OK")
</pallas_src>

<mosaic_0001>
module attributes {stable_mosaic.version = 11 : i64} {
  func.func @_sage2_fused_kernel(%arg0: memref<128x128xbf16, #tpu.memory_space<vmem>>, %arg1: memref<128x128xbf16, #tpu.memory_space<vmem>>, %arg2: memref<256x128xbf16, #tpu.memory_space<vmem>>, %arg3: memref<1x128xf32, #tpu.memory_space<vmem>>, %arg4: memref<256x128xbf16, #tpu.memory_space<vmem>>, %arg5: memref<1x128xf32, #tpu.memory_space<vmem>>, %arg6: memref<128x128xf32, #tpu.memory_space<vmem>>) attributes {dimension_semantics = [], scalar_prefetch = 0 : i64, scratch_operands = 0 : i64, tpu.core_type = #tpu.core_type<tc>} {
    %c0 = arith.constant 0 : index
    %c0_0 = arith.constant 0 : index
    %0 = vector.load %arg0[%c0, %c0_0] : memref<128x128xbf16, #tpu.memory_space<vmem>>, vector<128x128xbf16>
    %c0_1 = arith.constant 0 : index
    %c0_2 = arith.constant 0 : index
    %1 = vector.load %arg1[%c0_1, %c0_2] : memref<128x128xbf16, #tpu.memory_space<vmem>>, vector<128x128xbf16>
    %cst = arith.constant dense<0.000000e+00> : vector<128x128xf32>
    %2 = tpu.matmul %0, %1, %cst {dimension_numbers = #tpu.dot_dimension_numbers<[1], [0], [0], [1], [0, 0, 1, 1], [], []>} : vector<128x128xbf16>, vector<128x128xbf16>, vector<128x128xf32> -> vector<128x128xf32>
    %3 = arith.truncf %2 : vector<128x128xf32> to vector<128x128xbf16>
    %4 = tpu.concatenate %1, %3 in 1 : vector<128x128xbf16>, vector<128x128xbf16> -> vector<128x256xbf16>
    %c0_3 = arith.constant 0 : index
    %c0_4 = arith.constant 0 : index
    %5 = vector.load %arg2[%c0_3, %c0_4] : memref<256x128xbf16, #tpu.memory_space<vmem>>, vector<256x128xbf16>
    %cst_5 = arith.constant dense<0.000000e+00> : vector<128x128xf32>
    %6 = tpu.matmul %4, %5, %cst_5 {dimension_numbers = #tpu.dot_dimension_numbers<[1], [0], [0], [1], [0, 0, 1, 1], [], []>} : vector<128x256xbf16>, vector<256x128xbf16>, vector<128x128xf32> -> vector<128x128xf32>
    %c0_6 = arith.constant 0 : index
    %c0_7 = arith.constant 0 : index
    %7 = vector.load %arg3[%c0_6, %c0_7] : memref<1x128xf32, #tpu.memory_space<vmem>>, vector<1x128xf32>
    %8 = vector.broadcast %7 : vector<1x128xf32> to vector<128x128xf32>
    %9 = arith.addf %6, %8 : vector<128x128xf32>
    %cst_8 = arith.constant 0.000000e+00 : f32
    %10 = vector.broadcast %cst_8 : f32 to vector<128x128xf32>
    %11 = arith.cmpf ogt, %9, %10 : vector<128x128xf32>
    %12 = math.exp %9 : vector<128x128xf32>
    %cst_9 = arith.constant 1.000000e+00 : f32
    %13 = vector.broadcast %cst_9 : f32 to vector<128x128xf32>
    %14 = arith.subf %12, %13 : vector<128x128xf32>
    %15 = arith.select %11, %9, %14 : vector<128x128xi1>, vector<128x128xf32>
    %16 = arith.truncf %15 : vector<128x128xf32> to vector<128x128xbf16>
    %cst_10 = arith.constant dense<0.000000e+00> : vector<128x128xf32>
    %17 = tpu.matmul %0, %16, %cst_10 {dimension_numbers = #tpu.dot_dimension_numbers<[1], [0], [0], [1], [0, 0, 1, 1], [], []>} : vector<128x128xbf16>, vector<128x128xbf16>, vector<128x128xf32> -> vector<128x128xf32>
    %18 = arith.truncf %17 : vector<128x128xf32> to vector<128x128xbf16>
    %19 = tpu.concatenate %16, %18 in 1 : vector<128x128xbf16>, vector<128x128xbf16> -> vector<128x256xbf16>
    %c0_11 = arith.constant 0 : index
    %c0_12 = arith.constant 0 : index
    %20 = vector.load %arg4[%c0_11, %c0_12] : memref<256x128xbf16, #tpu.memory_space<vmem>>, vector<256x128xbf16>
    %cst_13 = arith.constant dense<0.000000e+00> : vector<128x128xf32>
    %21 = tpu.matmul %19, %20, %cst_13 {dimension_numbers = #tpu.dot_dimension_numbers<[1], [0], [0], [1], [0, 0, 1, 1], [], []>} : vector<128x256xbf16>, vector<256x128xbf16>, vector<128x128xf32> -> vector<128x128xf32>
    %c0_14 = arith.constant 0 : index
    %c0_15 = arith.constant 0 : index
    %22 = vector.load %arg5[%c0_14, %c0_15] : memref<1x128xf32, #tpu.memory_space<vmem>>, vector<1x128xf32>
    %23 = vector.broadcast %22 : vector<1x128xf32> to vector<128x128xf32>
    %24 = arith.addf %21, %23 : vector<128x128xf32>
    %c0_16 = arith.constant 0 : index
    %c0_17 = arith.constant 0 : index
    %25 = vector.load %arg6[%c0_16, %c0_17] : memref<128x128xf32, #tpu.memory_space<vmem>>, vector<128x128xf32>
    tpu.vector_store %arg6[%c0_16, %c0_17], %24 {strides = array<i32>} : memref<128x128xf32, #tpu.memory_space<vmem>>, vector<128x128xf32>,
    return
  }
}

</mosaic_0001>

<bundles_post_ra>
// kernel: two_layer_graphsage.1
= control target key start
LH: loop header
LB: loop body
LE: loop exit
PB: predicated region body
PF: predicated region fallthrough
CT: control target
= control target key end

     0   :  { %s1681_s1 = inlined_call_operand.vmem [shape: bf16[128,128], index: 1, kind: input, shape index: {}]   ;;  %s1682_s0 = inlined_call_operand.vmem [shape: bf16[128,128], index: 0, kind: input, shape index: {}]   ;;  %s1683_s2 = inlined_call_operand.vmem [shape: bf16[256,128], index: 2, kind: input, shape index: {}]   ;;  %s1684_s4 = inlined_call_operand.vmem [shape: bf16[256,128], index: 4, kind: input, shape index: {}]   ;;  %s1685_s3 = inlined_call_operand.vmem [shape: f32[1,128], index: 3, kind: input, shape index: {}]   ;;  %s1686_s5 = inlined_call_operand.vmem [shape: f32[1,128], index: 5, kind: input, shape index: {}]   ;;  %s1687_s6 = inlined_call_operand.vmem [shape: f32[128,128], index: 6, kind: output, shape index: {}]  }
   0x1   :  { %v1342_v0 = vld [vmem:[%s1681_s1] sm:$0xff]   ;;  %v1347_v1 = vld [vmem:[%s1681_s1 + $0x8] sm:$0xff]   ;;  %v1355_v2 = vld [vmem:[%s1681_s1 + $0x10] sm:$0xff]  }
   0x2   :  { %1160 = vmatprep.subr.bf16.mxu1 %v1342_v0  ;;  %v1361_v3 = vld [vmem:[%s1681_s1 + $0x18] sm:$0xff]   ;;  %v1232_v4 = vld [vmem:[%s1682_s0] sm:$0xff]   ;;  %v1379_v6 = vld [vmem:[%s1681_s1 + $0x28] sm:$0xff]  }
   0x3   :  { %1161 = vmatpush3.bf16.msra.mxu1 %v1342_v0  ;;  %1176 = vmatprep.mubr.bf16.mxu1 %v1232_v4  ;;  %v1372_v5 = vld [vmem:[%s1681_s1 + $0x20] sm:$0xff]   ;;  %v1386_v7 = vld [vmem:[%s1681_s1 + $0x30] sm:$0xff]   ;;  %v1393_v8 = vld [vmem:[%s1681_s1 + $0x38] sm:$0xff]  }
   0x4   :  { %1162 = vmatprep.subr.bf16.mxu1 %v1347_v1  ;;  %1208 = vmatprep.mubr.bf16.mxu0 %v1232_v4  ;;  %v1240_v9 = vld [vmem:[%s1683_s2 + $0x40] sm:$0xff]   ;;  %v1403_v10 = vld [vmem:[%s1682_s0 + $0x8] sm:$0xff]   ;;  %v1409_v11 = vld [vmem:[%s1682_s0 + $0x10] sm:$0xff]  }
   0x5   :  { %v1241_v12 = vld [vmem:[%s1683_s2] sm:$0xff]   ;;  %v1242_v13 = vld [vmem:[%s1683_s2 + $0x48] sm:$0xff]   ;;  %v1244_v15 = vld [vmem:[%s1683_s2 + $0x50] sm:$0xff]  }
   0x6   :  { %v1243_v14 = vld [vmem:[%s1683_s2 + $0x8] sm:$0xff]   ;;  %v1428_v16 = vld [vmem:[%s1682_s0 + $0x18] sm:$0xff]   ;;  %v1433_v17 = vld [vmem:[%s1682_s0 + $0x20] sm:$0xff]  }
   0x7   :  { %1163 = vmatpush3.bf16.msra.mxu1 %v1347_v1  ;;  %v1245_v18 = vld [vmem:[%s1683_s2 + $0x10] sm:$0xff]   ;;  %v1246_v19 = vld [vmem:[%s1683_s2 + $0x58] sm:$0xff]   ;;  %v1248_v21 = vld [vmem:[%s1683_s2 + $0x60] sm:$0xff]  }
   0x8   :  { %1164 = vmatprep.subr.bf16.mxu1 %v1355_v2  ;;  %v1247_v20 = vld [vmem:[%s1683_s2 + $0x18] sm:$0xff]   ;;  %v1452_v22 = vld [vmem:[%s1682_s0 + $0x28] sm:$0xff]   ;;  %v1457_v23 = vld [vmem:[%s1682_s0 + $0x30] sm:$0xff]  }
   0x9   :  { %v1249_v24 = vld [vmem:[%s1683_s2 + $0x20] sm:$0xff]   ;;  %v1250_v25 = vld [vmem:[%s1683_s2 + $0x68] sm:$0xff]   ;;  %v1252_v27 = vld [vmem:[%s1683_s2 + $0x70] sm:$0xff]  }
   0xa   :  { %v1251_v26 = vld [vmem:[%s1683_s2 + $0x28] sm:$0xff]   ;;  %v1476_v28 = vld [vmem:[%s1682_s0 + $0x38] sm:$0xff]   ;;  %v1253_v29 = vld [vmem:[%s1683_s2 + $0x30] sm:$0xff]  }
   0xb   :  { %1165 = vmatpush3.bf16.msra.mxu1 %v1355_v2  ;;  %v1254_v30 = vld [vmem:[%s1683_s2 + $0x78] sm:$0xff]   ;;  %v1499_v57 = vld [vmem:[%s1685_s3] ss:$0 sm:$0xff] }
   0xc   :  { %1166 = vmatprep.subr.bf16.mxu1 %v1361_v3  ;;  %v1255_v31 = vld [vmem:[%s1683_s2 + $0x38] sm:$0xff]  }
   0xf   :  { %1167 = vmatpush3.bf16.msra.mxu1 %v1361_v3 }
  0x10   :  { %1168 = vmatprep.subr.bf16.mxu1 %v1372_v5 }
  0x13   :  { %1169 = vmatpush3.bf16.msra.mxu1 %v1372_v5 }
  0x14   :  { %1170 = vmatprep.subr.bf16.mxu1 %v1379_v6 }
  0x17   :  { %1171 = vmatpush3.bf16.msra.mxu1 %v1379_v6 }
  0x18   :  { %1172 = vmatprep.subr.bf16.mxu1 %v1386_v7 }
  0x1b   :  { %1173 = vmatpush3.bf16.msra.mxu1 %v1386_v7 }
  0x1c   :  { %1174 = vmatprep.subr.bf16.mxu1 %v1393_v8 }
  0x1f   :  { %1175 = vmatpush3.bf16.msra.mxu1 %v1393_v8 }
  0x20   :  { %1016 = vmatprep.subr.bf16.mxu1 %v1240_v9 }
  0x22   :  { %1177 = vmatmul.mubr.bf16.vlgmr.msra.gmra.mrb[0].mxu1 %v1403_v10 }
  0x23   :  { %1180 = vmatprep.mubr.bf16.mxu1 %v1409_v11  ;;  %1017 = vmatpush3.bf16.msra.mxu1 %v1241_v12 }
  0x24   :  { %1018 = vmatprep.subr.bf16.mxu1 %v1242_v13 }
  0x27   :  { %1019 = vmatpush3.bf16.msra.mxu1 %v1243_v14 }
  0x28   :  { %1020 = vmatprep.subr.bf16.mxu1 %v1244_v15 }
  0x2a   :  { %1181 = vmatmul.mubr.bf16.gmra.mrb[4].mxu1 %v1428_v16 }
  0x2b   :  { %1184 = vmatprep.mubr.bf16.mxu1 %v1433_v17  ;;  %1021 = vmatpush3.bf16.msra.mxu1 %v1245_v18 }
  0x2c   :  { %1022 = vmatprep.subr.bf16.mxu1 %v1246_v19 }
  0x2f   :  { %1023 = vmatpush3.bf16.msra.mxu1 %v1247_v20 }
  0x30   :  { %1024 = vmatprep.subr.bf16.mxu1 %v1248_v21 }
  0x32   :  { %1185 = vmatmul.mubr.bf16.gmra.mrb[8].mxu1 %v1452_v22 }
  0x33   :  { %1188 = vmatprep.mubr.bf16.mxu1 %v1457_v23  ;;  %1025 = vmatpush3.bf16.msra.mxu1 %v1249_v24 }
  0x34   :  { %1026 = vmatprep.subr.bf16.mxu1 %v1250_v25 }
  0x37   :  { %1027 = vmatpush3.bf16.msra.mxu1 %v1251_v26 }
  0x38   :  { %1028 = vmatprep.subr.bf16.mxu1 %v1252_v27 }
  0x3a   :  { %1189 = vmatmul.mubr.bf16.gmra.mrb[12].mxu1 %v1476_v28 }
  0x3b   :  { %1029 = vmatpush3.bf16.msra.mxu1 %v1253_v29 }
  0x3c   :  { %1030 = vmatprep.subr.bf16.mxu1 %v1254_v30 }
  0x3f   :  { %1031 = vmatpush3.bf16.msra.mxu1 %v1255_v31 }
  0xf5   :  { %v1178_v32 = vpop.f32.mrb[0].mxu1 }
  0xf6   :  { %v186_v33 = vpop.f32.mrb[1].mxu1 }
  0xf7   :  { %v1179_v34 = vpop.f32.mrb[2].mxu1 }
  0xf8   :  { %v250_v35 = vpack.c.bf16 %v1179_v34, %v1178_v32  ;;  %v189_v36 = vpop.f32.mrb[3].mxu1 }
  0xf9   :  { %v249_v37 = vpack.c.bf16 %v189_v36, %v186_v33 }
  0xfb   :  { %424 = vmatprep.mubr.bf16.mxu1 %v249_v37 }
  0xfc   :  { %425 = vmatmul.mubr.bf16.vlgmr.msra.gmra.mrb[16].mxu1 %v1342_v0 }
  0xfd   :  { %432 = vmatprep.mubr.bf16.mxu1 %v250_v35  ;;  %v1182_v38 = vpop.f32.mrb[4].mxu1 }
  0xfe   :  { %v202_v39 = vpop.f32.mrb[5].mxu1 }
  0xff   :  { %v1183_v40 = vpop.f32.mrb[6].mxu1 }
 0x100   :  { %v252_v41 = vpack.c.bf16 %v1183_v40, %v1182_v38  ;;  %v205_v42 = vpop.f32.mrb[7].mxu1 }
 0x101   :  { %v251_v43 = vpack.c.bf16 %v205_v42, %v202_v39 }
 0x104   :  { %433 = vmatmul.mubr.bf16.gmra.mrb[20].mxu1 %v1347_v1 }
 0x105   :  { %440 = vmatprep.mubr.bf16.mxu1 %v251_v43  ;;  %v1186_v44 = vpop.f32.mrb[8].mxu1 }
 0x106   :  { %v218_v45 = vpop.f32.mrb[9].mxu1 }
 0x107   :  { %v1187_v46 = vpop.f32.mrb[10].mxu1 }
 0x108   :  { %v254_v47 = vpack.c.bf16 %v1187_v46, %v1186_v44  ;;  %v221_v48 = vpop.f32.mrb[11].mxu1 }
 0x109   :  { %v253_v49 = vpack.c.bf16 %v221_v48, %v218_v45 }
 0x10c   :  { %441 = vmatmul.mubr.bf16.gmra.mrb[24].mxu1 %v1355_v2 }
 0x10d   :  { %448 = vmatprep.mubr.bf16.mxu1 %v252_v41  ;;  %v1190_v50 = vpop.f32.mrb[12].mxu1 }
 0x10e   :  { %v234_v51 = vpop.f32.mrb[13].mxu1 }
 0x10f   :  { %v1191_v52 = vpop.f32.mrb[14].mxu1 }
 0x110   :  { %v256_v53 = vpack.c.bf16 %v1191_v52, %v1190_v50  ;;  %v237_v54 = vpop.f32.mrb[15].mxu1 }
 0x111   :  { %v255_v55 = vpack.c.bf16 %v237_v54, %v234_v51 }
 0x114   :  { %449 = vmatmul.mubr.bf16.gmra.mrb[28].mxu1 %v1361_v3 }
 0x115   :  { %456 = vmatprep.mubr.bf16.mxu1 %v253_v49 }
 0x11c   :  { %457 = vmatmul.mubr.bf16.gmra.mrb[32].mxu1 %v1372_v5 }
 0x11d   :  { %464 = vmatprep.mubr.bf16.mxu1 %v254_v47 }
 0x124   :  { %465 = vmatmul.mubr.bf16.gmra.mrb[36].mxu1 %v1379_v6 }
 0x125   :  { %472 = vmatprep.mubr.bf16.mxu1 %v255_v55 }
 0x12c   :  { %473 = vmatmul.mubr.bf16.gmra.mrb[40].mxu1 %v1386_v7 }
 0x12d   :  { %480 = vmatprep.mubr.bf16.mxu1 %v256_v53 }
 0x134   :  { %481 = vmatmul.mubr.bf16.gmra.mrb[44].mxu1 %v1393_v8 }
 0x1cf   :  { %v1032_v56 = vpop.f32.mrb[16].mxu1 }
 0x1d0   :  { %v1033_v58 = vpop.f32.mrb[17].mxu1 }
 0x1d1   :  { %v1034_v59 = vadd.f32 %v1033_v58, %v1032_v56  ;;  %v1035_v60 = vpop.f32.mrb[18].mxu1 }
 0x1d2   :  { %v1036_v61 = vpop.f32.mrb[19].mxu1 }
 0x1d3   :  { %v427_v62 = vadd.f32 %v1034_v59, %v1499_v57  ;;  %v1037_v63 = vadd.f32 %v1036_v61, %v1035_v60 }
 0x1d5   :  { %v505_v0 = vmul.f32 1.442695, %v427_v62  ;;  %v430_v1 = vadd.f32 %v1037_v63, %v1499_v57  ;;  %vm489_vm0 = vcmp.gt.f32.partialorder %v427_v62, 0.0 }
 0x1d7   :  { %1272 = vpow2.f32 %v505_v0  ;;  %v507_v2 = vmul.f32 1.442695, %v430_v1  ;;  %v1038_v3 = vpop.f32.mrb[20].mxu1  ;;  %vm490_vm1 = vcmp.gt.f32.partialorder %v430_v1, 0.0 }
 0x1d8   :  { %v1039_v4 = vpop.f32.mrb[21].mxu1 }
 0x1d9   :  { %1274 = vpow2.f32 %v507_v2  ;;  %v1040_v5 = vadd.f32 %v1039_v4, %v1038_v3  ;;  %v1041_v6 = vpop.f32.mrb[22].mxu1 }
 0x1da   :  { %v1042_v7 = vpop.f32.mrb[23].mxu1 }
 0x1db   :  { %v435_v8 = vadd.f32 %v1040_v5, %v1499_v57  ;;  %v1043_v9 = vadd.f32 %v1042_v7, %v1041_v6 }
 0x1dd   :  { %v509_v12 = vmul.f32 1.442695, %v435_v8  ;;  %v438_v13 = vadd.f32 %v1043_v9, %v1499_v57  ;;  %vm491_vm2 = vcmp.gt.f32.partialorder %v435_v8, 0.0 }
 0x1df   :  { %1276 = vpow2.f32 %v509_v12  ;;  %v511_v14 = vmul.f32 1.442695, %v438_v13  ;;  %v1044_v15 = vpop.f32.mrb[24].mxu1  ;;  %vm492_vm3 = vcmp.gt.f32.partialorder %v438_v13, 0.0 }
 0x1e0   :  { %v1045_v18 = vpop.f32.mrb[25].mxu1 }
 0x1e1   :  { %v1273_v19 = vpop.eup %1272  ;;  %1278 = vpow2.f32 %v511_v14  ;;  %v1046_v20 = vadd.f32 %v1045_v18, %v1044_v15  ;;  %v1047_v21 = vpop.f32.mrb[26].mxu1 }
 0x1e2   :  { %v1048_v24 = vpop.f32.mrb[27].mxu1  ;;  %v967_v25 = vadd.f32 -1.0, %v1273_v19 }
 0x1e3   :  { %v1275_v26 = vpop.eup %1274  ;;  %v443_v27 = vadd.f32 %v1046_v20, %v1499_v57  ;;  %v1049_v29 = vadd.f32 %v1048_v24, %v1047_v21 }
 0x1e4   :  { %v968_v30 = vadd.f32 -1.0, %v1275_v26  ;;  %v553_v33 = vsel %vm489_vm0, %v427_v62, %v967_v25 }
 0x1e5   :  { %v513_v31 = vmul.f32 1.442695, %v443_v27  ;;  %v446_v32 = vadd.f32 %v1049_v29, %v1499_v57  ;;  %vm493_vm4 = vcmp.gt.f32.partialorder %v443_v27, 0.0 }
 0x1e6   :  { %v554_v34 = vsel %vm490_vm1, %v430_v1, %v968_v30 }
 0x1e7   :  { %1280 = vpow2.f32 %v513_v31  ;;  %v515_v35 = vmul.f32 1.442695, %v446_v32  ;;  %v1050_v36 = vpop.f32.mrb[28].mxu1  ;;  %v1507_v37 = vpack.c.bf16 %v554_v34, %v553_v33  ;;  %vm494_vm5 = vcmp.gt.f32.partialorder %v446_v32, 0.0 }
 0x1e8   :  { %v1051_v38 = vpop.f32.mrb[29].mxu1 }
 0x1e9   :  { %v1277_v39 = vpop.eup %1276  ;;  %1282 = vpow2.f32 %v515_v35  ;;  %v1052_v40 = vadd.f32 %v1051_v38, %v1050_v36  ;;  %v1053_v41 = vpop.f32.mrb[30].mxu1  ;;  %1192 = vmatprep.subr.bf16.mxu0 %v1507_v37 }
 0x1ea   :  { %v1054_v42 = vpop.f32.mrb[31].mxu1  ;;  %1193 = vmatpush3.bf16.msra.mxu0 %v1507_v37  ;;  %v969_v43 = vadd.f32 -1.0, %v1277_v39 }
 0x1eb   :  { %v1279_v44 = vpop.eup %1278  ;;  %v451_v45 = vadd.f32 %v1052_v40, %v1499_v57  ;;  %v1055_v46 = vadd.f32 %v1054_v42, %v1053_v41 }
 0x1ec   :  { %v970_v47 = vadd.f32 -1.0, %v1279_v44  ;;  %v555_v50 = vsel %vm491_vm2, %v435_v8, %v969_v43 }
 0x1ed   :  { %v517_v48 = vmul.f32 1.442695, %v451_v45  ;;  %v454_v49 = vadd.f32 %v1055_v46, %v1499_v57  ;;  %vm495_vm6 = vcmp.gt.f32.partialorder %v451_v45, 0.0 }
 0x1ee   :  { %v556_v51 = vsel %vm492_vm3, %v438_v13, %v970_v47 }
 0x1ef   :  { %1284 = vpow2.f32 %v517_v48  ;;  %v519_v52 = vmul.f32 1.442695, %v454_v49  ;;  %v1056_v53 = vpop.f32.mrb[32].mxu1  ;;  %v1513_v54 = vpack.c.bf16 %v556_v51, %v555_v50  ;;  %vm496_vm7 = vcmp.gt.f32.partialorder %v454_v49, 0.0 }
 0x1f0   :  { %v1057_v55 = vpop.f32.mrb[33].mxu1 }
 0x1f1   :  { %v1281_v56 = vpop.eup %1280  ;;  %1286 = vpow2.f32 %v519_v52  ;;  %v1058_v58 = vadd.f32 %v1057_v55, %v1056_v53  ;;  %v1059_v59 = vpop.f32.mrb[34].mxu1  ;;  %1194 = vmatprep.subr.bf16.mxu0 %v1513_v54 }
 0x1f2   :  { %v1060_v60 = vpop.f32.mrb[35].mxu1  ;;  %1195 = vmatpush3.bf16.msra.mxu0 %v1513_v54  ;;  %v971_v61 = vadd.f32 -1.0, %v1281_v56 }
 0x1f3   :  { %v1283_v62 = vpop.eup %1282  ;;  %v459_v63 = vadd.f32 %v1058_v58, %v1499_v57  ;;  %v1061_v0 = vadd.f32 %v1060_v60, %v1059_v59 }
 0x1f4   :  { %v972_v1 = vadd.f32 -1.0, %v1283_v62  ;;  %v557_v4 = vsel %vm493_vm4, %v443_v27, %v971_v61 }
 0x1f5   :  { %v521_v2 = vmul.f32 1.442695, %v459_v63  ;;  %v462_v3 = vadd.f32 %v1061_v0, %v1499_v57  ;;  %vm497_vm8 = vcmp.gt.f32.partialorder %v459_v63, 0.0 }
 0x1f6   :  { %v558_v5 = vsel %vm494_vm5, %v446_v32, %v972_v1 }
 0x1f7   :  { %1288 = vpow2.f32 %v521_v2  ;;  %v523_v6 = vmul.f32 1.442695, %v462_v3  ;;  %v1062_v7 = vpop.f32.mrb[36].mxu1  ;;  %v1519_v8 = vpack.c.bf16 %v558_v5, %v557_v4  ;;  %vm498_vm9 = vcmp.gt.f32.partialorder %v462_v3, 0.0 }
 0x1f8   :  { %v1063_v9 = vpop.f32.mrb[37].mxu1 }
 0x1f9   :  { %v1285_v12 = vpop.eup %1284  ;;  %1290 = vpow2.f32 %v523_v6  ;;  %v1064_v13 = vadd.f32 %v1063_v9, %v1062_v7  ;;  %v1065_v14 = vpop.f32.mrb[38].mxu1  ;;  %1196 = vmatprep.subr.bf16.mxu0 %v1519_v8 }
 0x1fa   :  { %v1066_v15 = vpop.f32.mrb[39].mxu1  ;;  %1197 = vmatpush3.bf16.msra.mxu0 %v1519_v8  ;;  %v973_v18 = vadd.f32 -1.0, %v1285_v12 }
 0x1fb   :  { %v1287_v19 = vpop.eup %1286  ;;  %v467_v20 = vadd.f32 %v1064_v13, %v1499_v57  ;;  %v1067_v21 = vadd.f32 %v1066_v15, %v1065_v14 }
 0x1fc   :  { %v974_v24 = vadd.f32 -1.0, %v1287_v19  ;;  %v559_v27 = vsel %vm495_vm6, %v451_v45, %v973_v18 }
 0x1fd   :  { %v525_v25 = vmul.f32 1.442695, %v467_v20  ;;  %v470_v26 = vadd.f32 %v1067_v21, %v1499_v57  ;;  %vm499_vm10 = vcmp.gt.f32.partialorder %v467_v20, 0.0 }
 0x1fe   :  { %v560_v29 = vsel %vm496_vm7, %v454_v49, %v974_v24 }
 0x1ff   :  { %1292 = vpow2.f32 %v525_v25  ;;  %v527_v30 = vmul.f32 1.442695, %v470_v26  ;;  %v1068_v31 = vpop.f32.mrb[40].mxu1  ;;  %v1525_v32 = vpack.c.bf16 %v560_v29, %v559_v27  ;;  %vm500_vm11 = vcmp.gt.f32.partialorder %v470_v26, 0.0  ;;  %v1256_v25 = vld [vmem:[%s1684_s4 + $0x40] sm:$0xff]   ;;  %v1258_v27 = vld [vmem:[%s1684_s4 + $0x48] sm:$0xff]  }
 0x200   :  { %v1069_v33 = vpop.f32.mrb[41].mxu1  ;;  %v1259_v29 = vld [vmem:[%s1684_s4 + $0x8] sm:$0xff]  }
 0x201   :  { %v1289_v34 = vpop.eup %1288  ;;  %1294 = vpow2.f32 %v527_v30  ;;  %v1070_v35 = vadd.f32 %v1069_v33, %v1068_v31  ;;  %v1071_v36 = vpop.f32.mrb[42].mxu1  ;;  %1198 = vmatprep.subr.bf16.mxu0 %v1525_v32  ;;  %v1260_v30 = vld [vmem:[%s1684_s4 + $0x50] sm:$0xff]   ;;  %v1264_v33 = vld [vmem:[%s1684_s4 + $0x60] sm:$0xff]  }
 0x202   :  { %v1072_v38 = vpop.f32.mrb[43].mxu1  ;;  %1199 = vmatpush3.bf16.msra.mxu0 %v1525_v32  ;;  %v975_v39 = vadd.f32 -1.0, %v1289_v34  ;;  %v1261_v31 = vld [vmem:[%s1684_s4 + $0x10] sm:$0xff]   ;;  %v1265_v34 = vld [vmem:[%s1684_s4 + $0x20] sm:$0xff]  }
 0x203   :  { %v1291_v40 = vpop.eup %1290  ;;  %v475_v41 = vadd.f32 %v1070_v35, %v1499_v57  ;;  %v1073_v42 = vadd.f32 %v1072_v38, %v1071_v36  ;;  %v1268_v35 = vld [vmem:[%s1684_s4 + $0x70] sm:$0xff]  }
 0x204   :  { %v976_v43 = vadd.f32 -1.0, %v1291_v40  ;;  %v561_v46 = vsel %vm497_vm8, %v459_v63, %v975_v39  ;;  %v1269_v36 = vld [vmem:[%s1684_s4 + $0x30] sm:$0xff]  }
 0x205   :  { %v529_v44 = vmul.f32 1.442695, %v475_v41  ;;  %v478_v45 = vadd.f32 %v1073_v42, %v1499_v57  ;;  %vm501_vm12 = vcmp.gt.f32.partialorder %v475_v41, 0.0 }
 0x206   :  { %v562_v47 = vsel %vm498_vm9, %v462_v3, %v976_v43 }
 0x207   :  { %1296 = vpow2.f32 %v529_v44  ;;  %v531_v48 = vmul.f32 1.442695, %v478_v45  ;;  %v1074_v49 = vpop.f32.mrb[44].mxu1  ;;  %v1531_v50 = vpack.c.bf16 %v562_v47, %v561_v46  ;;  %vm502_vm13 = vcmp.gt.f32.partialorder %v478_v45, 0.0 }
 0x208   :  { %v1075_v51 = vpop.f32.mrb[45].mxu1 }
 0x209   :  { %v1293_v52 = vpop.eup %1292  ;;  %1298 = vpow2.f32 %v531_v48  ;;  %v1076_v53 = vadd.f32 %v1075_v51, %v1074_v49  ;;  %v1077_v55 = vpop.f32.mrb[46].mxu1  ;;  %1200 = vmatprep.subr.bf16.mxu0 %v1531_v50 }
 0x20a   :  { %v1078_v56 = vpop.f32.mrb[47].mxu1  ;;  %1201 = vmatpush3.bf16.msra.mxu0 %v1531_v50  ;;  %v977_v58 = vadd.f32 -1.0, %v1293_v52 }
 0x20b   :  { %v1295_v59 = vpop.eup %1294  ;;  %v483_v60 = vadd.f32 %v1076_v53, %v1499_v57  ;;  %v1079_v61 = vadd.f32 %v1078_v56, %v1077_v55 }
 0x20c   :  { %v978_v62 = vadd.f32 -1.0, %v1295_v59  ;;  %v563_v1 = vsel %vm499_vm10, %v467_v20, %v977_v58 }
 0x20d   :  { %v533_v63 = vmul.f32 1.442695, %v483_v60  ;;  %v486_v0 = vadd.f32 %v1079_v61, %v1499_v57  ;;  %vm503_vm14 = vcmp.gt.f32.partialorder %v483_v60, 0.0 }
 0x20e   :  { %v564_v2 = vsel %vm500_vm11, %v470_v26, %v978_v62  ;;  %v1257_v26 = vld [vmem:[%s1684_s4] sm:$0xff]  }
 0x20f   :  { %1300 = vpow2.f32 %v533_v63  ;;  %v535_v3 = vmul.f32 1.442695, %v486_v0  ;;  %v1537_v4 = vpack.c.bf16 %v564_v2, %v563_v1  ;;  %vm504_vm15 = vcmp.gt.f32.partialorder %v486_v0, 0.0 }
 0x211   :  { %v1297_v5 = vpop.eup %1296  ;;  %1302 = vpow2.f32 %v535_v3  ;;  %1202 = vmatprep.subr.bf16.mxu0 %v1537_v4 }
 0x212   :  { %1203 = vmatpush3.bf16.msra.mxu0 %v1537_v4  ;;  %v979_v6 = vadd.f32 -1.0, %v1297_v5 }
 0x213   :  { %v1299_v7 = vpop.eup %1298 }
 0x214   :  { %v980_v9 = vadd.f32 -1.0, %v1299_v7  ;;  %v565_v12 = vsel %vm501_vm12, %v475_v41, %v979_v6 }
 0x216   :  { %v566_v13 = vsel %vm502_vm13, %v478_v45, %v980_v9 }
 0x217   :  { %v1541_v57 = vpack.c.bf16 %v566_v13, %v565_v12 }
 0x219   :  { %v1301_v14 = vpop.eup %1300  ;;  %1204 = vmatprep.subr.bf16.mxu0 %v1541_v57 }
 0x21a   :  { %1205 = vmatpush3.bf16.msra.mxu0 %v1541_v57  ;;  %v981_v15 = vadd.f32 -1.0, %v1301_v14 }
 0x21b   :  { %v1303_v18 = vpop.eup %1302 }
 0x21c   :  { %v982_v19 = vadd.f32 -1.0, %v1303_v18  ;;  %v567_v20 = vsel %vm503_vm14, %v483_v60, %v981_v15 }
 0x21e   :  { %v568_v21 = vsel %vm504_vm15, %v486_v0, %v982_v19 }
 0x21f   :  { %v1545_v24 = vpack.c.bf16 %v568_v21, %v567_v20 }
 0x221   :  { %1206 = vmatprep.subr.bf16.mxu0 %v1545_v24 }
 0x222   :  { %1207 = vmatpush3.bf16.msra.mxu0 %v1545_v24 }
 0x223   :  { %1096 = vmatprep.subr.bf16.mxu0 %v1256_v25 }
 0x225   :  { %1209 = vmatmul.mubr.bf16.vlgmr.msra.gmra.mrb[0].mxu0 %v1403_v10  ;;  %v1262_v10 = vld [vmem:[%s1684_s4 + $0x58] sm:$0xff]  }
 0x226   :  { %1212 = vmatprep.mubr.bf16.mxu0 %v1409_v11  ;;  %1097 = vmatpush3.bf16.msra.mxu0 %v1257_v26  ;;  %v1263_v11 = vld [vmem:[%s1684_s4 + $0x18] sm:$0xff]  }
 0x227   :  { %1098 = vmatprep.subr.bf16.mxu0 %v1258_v27 }
 0x22a   :  { %1099 = vmatpush3.bf16.msra.mxu0 %v1259_v29 }
 0x22b   :  { %1100 = vmatprep.subr.bf16.mxu0 %v1260_v30 }
 0x22d   :  { %1213 = vmatmul.mubr.bf16.gmra.mrb[4].mxu0 %v1428_v16  ;;  %v1266_v16 = vld [vmem:[%s1684_s4 + $0x68] sm:$0xff]  }
 0x22e   :  { %1216 = vmatprep.mubr.bf16.mxu0 %v1433_v17  ;;  %1101 = vmatpush3.bf16.msra.mxu0 %v1261_v31  ;;  %v1267_v17 = vld [vmem:[%s1684_s4 + $0x28] sm:$0xff]  }
 0x22f   :  { %1102 = vmatprep.subr.bf16.mxu0 %v1262_v10 }
 0x232   :  { %1103 = vmatpush3.bf16.msra.mxu0 %v1263_v11 }
 0x233   :  { %1104 = vmatprep.subr.bf16.mxu0 %v1264_v33 }
 0x235   :  { %1217 = vmatmul.mubr.bf16.gmra.mrb[8].mxu0 %v1452_v22  ;;  %v1270_v22 = vld [vmem:[%s1684_s4 + $0x78] sm:$0xff]  }
 0x236   :  { %1220 = vmatprep.mubr.bf16.mxu0 %v1457_v23  ;;  %1105 = vmatpush3.bf16.msra.mxu0 %v1265_v34  ;;  %v1271_v23 = vld [vmem:[%s1684_s4 + $0x38] sm:$0xff]  }
 0x237   :  { %1106 = vmatprep.subr.bf16.mxu0 %v1266_v16 }
 0x23a   :  { %1107 = vmatpush3.bf16.msra.mxu0 %v1267_v17 }
 0x23b   :  { %1108 = vmatprep.subr.bf16.mxu0 %v1268_v35 }
 0x23d   :  { %1221 = vmatmul.mubr.bf16.gmra.mrb[12].mxu0 %v1476_v28 }
 0x23e   :  { %1109 = vmatpush3.bf16.msra.mxu0 %v1269_v36 }
 0x23f   :  { %1110 = vmatprep.subr.bf16.mxu0 %v1270_v22 }
 0x242   :  { %1111 = vmatpush3.bf16.msra.mxu0 %v1271_v23 }
 0x2f8   :  { %v1210_v38 = vpop.f32.mrb[0].mxu0 }
 0x2f9   :  { %v611_v39 = vpop.f32.mrb[1].mxu0 }
 0x2fa   :  { %v1211_v40 = vpop.f32.mrb[2].mxu0 }
 0x2fb   :  { %v675_v41 = vpack.c.bf16 %v1211_v40, %v1210_v38  ;;  %v614_v42 = vpop.f32.mrb[3].mxu0 }
 0x2fc   :  { %v674_v43 = vpack.c.bf16 %v614_v42, %v611_v39 }
 0x2fe   :  { %849 = vmatprep.mubr.bf16.mxu0 %v674_v43 }
 0x2ff   :  { %850 = vmatmul.mubr.bf16.vlgmr.msra.gmra.mrb[16].mxu0 %v1507_v37 }
 0x300   :  { %857 = vmatprep.mubr.bf16.mxu0 %v675_v41  ;;  %v1214_v28 = vpop.f32.mrb[4].mxu0 }
 0x301   :  { %v627_v44 = vpop.f32.mrb[5].mxu0 }
 0x302   :  { %v1215_v45 = vpop.f32.mrb[6].mxu0 }
 0x303   :  { %v677_v46 = vpack.c.bf16 %v1215_v45, %v1214_v28  ;;  %v630_v47 = vpop.f32.mrb[7].mxu0 }
 0x304   :  { %v676_v48 = vpack.c.bf16 %v630_v47, %v627_v44 }
 0x307   :  { %858 = vmatmul.mubr.bf16.gmra.mrb[20].mxu0 %v1513_v54 }
 0x308   :  { %865 = vmatprep.mubr.bf16.mxu0 %v676_v48  ;;  %v1218_v49 = vpop.f32.mrb[8].mxu0 }
 0x309   :  { %v643_v51 = vpop.f32.mrb[9].mxu0 }
 0x30a   :  { %v1219_v52 = vpop.f32.mrb[10].mxu0 }
 0x30b   :  { %v679_v53 = vpack.c.bf16 %v1219_v52, %v1218_v49  ;;  %v646_v55 = vpop.f32.mrb[11].mxu0 }
 0x30c   :  { %v678_v56 = vpack.c.bf16 %v646_v55, %v643_v51 }
 0x30f   :  { %866 = vmatmul.mubr.bf16.gmra.mrb[24].mxu0 %v1519_v8  ;;  %v1615_v8 = vld [vmem:[%s1686_s5] ss:$0 sm:$0xff] }
 0x310   :  { %873 = vmatprep.mubr.bf16.mxu0 %v677_v46  ;;  %v1222_v37 = vpop.f32.mrb[12].mxu0 }
 0x311   :  { %v659_v58 = vpop.f32.mrb[13].mxu0 }
 0x312   :  { %v1223_v59 = vpop.f32.mrb[14].mxu0 }
 0x313   :  { %v681_v60 = vpack.c.bf16 %v1223_v59, %v1222_v37  ;;  %v662_v61 = vpop.f32.mrb[15].mxu0 }
 0x314   :  { %v680_v62 = vpack.c.bf16 %v662_v61, %v659_v58 }
 0x317   :  { %874 = vmatmul.mubr.bf16.gmra.mrb[28].mxu0 %v1525_v32 }
 0x318   :  { %881 = vmatprep.mubr.bf16.mxu0 %v678_v56 }
 0x31f   :  { %882 = vmatmul.mubr.bf16.gmra.mrb[32].mxu0 %v1531_v50 }
 0x320   :  { %889 = vmatprep.mubr.bf16.mxu0 %v679_v53 }
 0x327   :  { %890 = vmatmul.mubr.bf16.gmra.mrb[36].mxu0 %v1537_v4 }
 0x328   :  { %897 = vmatprep.mubr.bf16.mxu0 %v680_v62 }
 0x32f   :  { %898 = vmatmul.mubr.bf16.gmra.mrb[40].mxu0 %v1541_v57 }
 0x330   :  { %905 = vmatprep.mubr.bf16.mxu0 %v681_v60 }
 0x337   :  { %906 = vmatmul.mubr.bf16.gmra.mrb[44].mxu0 %v1545_v24 }
 0x3d2   :  { %v1112_v54 = vpop.f32.mrb[16].mxu0 }
 0x3d3   :  { %v1113_v63 = vpop.f32.mrb[17].mxu0 }
 0x3d4   :  { %v1114_v32 = vadd.f32 %v1113_v63, %v1112_v54  ;;  %v1115_v0 = vpop.f32.mrb[18].mxu0 }
 0x3d5   :  { %v1116_v1 = vpop.f32.mrb[19].mxu0 }
 0x3d6   :  { %v852_v50 = vadd.f32 %v1114_v32, %v1615_v8  ;;  %v1117_v2 = vadd.f32 %v1116_v1, %v1115_v0 }
 0x3d8   :  { %914 = vst [vmem:[%s1687_s6] sm:$0xff] %v852_v50  ;;  %v855_v3 = vadd.f32 %v1117_v2, %v1615_v8 }
 0x3da   :  { %915 = vst [vmem:[%s1687_s6 + $0x8] sm:$0xff] %v855_v3  ;;  %v1118_v4 = vpop.f32.mrb[20].mxu0 }
 0x3db   :  { %v1119_v5 = vpop.f32.mrb[21].mxu0 }
 0x3dc   :  { %v1120_v6 = vadd.f32 %v1119_v5, %v1118_v4  ;;  %v1121_v7 = vpop.f32.mrb[22].mxu0 }
 0x3dd   :  { %v1122_v9 = vpop.f32.mrb[23].mxu0 }
 0x3de   :  { %v860_v12 = vadd.f32 %v1120_v6, %v1615_v8  ;;  %v1123_v13 = vadd.f32 %v1122_v9, %v1121_v7 }
 0x3e0   :  { %916 = vst [vmem:[%s1687_s6 + $0x10] sm:$0xff] %v860_v12  ;;  %v863_v57 = vadd.f32 %v1123_v13, %v1615_v8 }
 0x3e2   :  { %917 = vst [vmem:[%s1687_s6 + $0x18] sm:$0xff] %v863_v57  ;;  %v1124_v14 = vpop.f32.mrb[24].mxu0 }
 0x3e3   :  { %v1125_v15 = vpop.f32.mrb[25].mxu0 }
 0x3e4   :  { %v1126_v18 = vadd.f32 %v1125_v15, %v1124_v14  ;;  %v1127_v19 = vpop.f32.mrb[26].mxu0 }
 0x3e5   :  { %v1128_v20 = vpop.f32.mrb[27].mxu0 }
 0x3e6   :  { %v868_v21 = vadd.f32 %v1126_v18, %v1615_v8  ;;  %v1129_v24 = vadd.f32 %v1128_v20, %v1127_v19 }
 0x3e8   :  { %918 = vst [vmem:[%s1687_s6 + $0x20] sm:$0xff] %v868_v21  ;;  %v871_v25 = vadd.f32 %v1129_v24, %v1615_v8 }
 0x3ea   :  { %919 = vst [vmem:[%s1687_s6 + $0x28] sm:$0xff] %v871_v25  ;;  %v1130_v26 = vpop.f32.mrb[28].mxu0 }
 0x3eb   :  { %v1131_v27 = vpop.f32.mrb[29].mxu0 }
 0x3ec   :  { %v1132_v29 = vadd.f32 %v1131_v27, %v1130_v26  ;;  %v1133_v30 = vpop.f32.mrb[30].mxu0 }
 0x3ed   :  { %v1134_v31 = vpop.f32.mrb[31].mxu0 }
 0x3ee   :  { %v876_v10 = vadd.f32 %v1132_v29, %v1615_v8  ;;  %v1135_v11 = vadd.f32 %v1134_v31, %v1133_v30 }
 0x3f0   :  { %920 = vst [vmem:[%s1687_s6 + $0x30] sm:$0xff] %v876_v10  ;;  %v879_v33 = vadd.f32 %v1135_v11, %v1615_v8 }
 0x3f2   :  { %921 = vst [vmem:[%s1687_s6 + $0x38] sm:$0xff] %v879_v33  ;;  %v1136_v34 = vpop.f32.mrb[32].mxu0 }
 0x3f3   :  { %v1137_v16 = vpop.f32.mrb[33].mxu0 }
 0x3f4   :  { %v1138_v17 = vadd.f32 %v1137_v16, %v1136_v34  ;;  %v1139_v35 = vpop.f32.mrb[34].mxu0 }
 0x3f5   :  { %v1140_v36 = vpop.f32.mrb[35].mxu0 }
 0x3f6   :  { %v884_v22 = vadd.f32 %v1138_v17, %v1615_v8  ;;  %v1141_v23 = vadd.f32 %v1140_v36, %v1139_v35 }
 0x3f8   :  { %922 = vst [vmem:[%s1687_s6 + $0x40] sm:$0xff] %v884_v22  ;;  %v887_v38 = vadd.f32 %v1141_v23, %v1615_v8 }
 0x3fa   :  { %923 = vst [vmem:[%s1687_s6 + $0x48] sm:$0xff] %v887_v38  ;;  %v1142_v39 = vpop.f32.mrb[36].mxu0 }
 0x3fb   :  { %v1143_v40 = vpop.f32.mrb[37].mxu0 }
 0x3fc   :  { %v1144_v41 = vadd.f32 %v1143_v40, %v1142_v39  ;;  %v1145_v42 = vpop.f32.mrb[38].mxu0 }
 0x3fd   :  { %v1146_v43 = vpop.f32.mrb[39].mxu0 }
 0x3fe   :  { %v892_v28 = vadd.f32 %v1144_v41, %v1615_v8  ;;  %v1147_v44 = vadd.f32 %v1146_v43, %v1145_v42 }
 0x400   :  { %924 = vst [vmem:[%s1687_s6 + $0x50] sm:$0xff] %v892_v28  ;;  %v895_v45 = vadd.f32 %v1147_v44, %v1615_v8 }
 0x402   :  { %925 = vst [vmem:[%s1687_s6 + $0x58] sm:$0xff] %v895_v45  ;;  %v1148_v46 = vpop.f32.mrb[40].mxu0 }
 0x403   :  { %v1149_v47 = vpop.f32.mrb[41].mxu0 }
 0x404   :  { %v1150_v48 = vadd.f32 %v1149_v47, %v1148_v46  ;;  %v1151_v49 = vpop.f32.mrb[42].mxu0 }
 0x405   :  { %v1152_v51 = vpop.f32.mrb[43].mxu0 }
 0x406   :  { %v900_v52 = vadd.f32 %v1150_v48, %v1615_v8  ;;  %v1153_v53 = vadd.f32 %v1152_v51, %v1151_v49 }
 0x408   :  { %926 = vst [vmem:[%s1687_s6 + $0x60] sm:$0xff] %v900_v52  ;;  %v903_v55 = vadd.f32 %v1153_v53, %v1615_v8 }
 0x40a   :  { %927 = vst [vmem:[%s1687_s6 + $0x68] sm:$0xff] %v903_v55  ;;  %v1154_v56 = vpop.f32.mrb[44].mxu0 }
 0x40b   :  { %v1155_v37 = vpop.f32.mrb[45].mxu0 }
 0x40c   :  { %v1156_v58 = vadd.f32 %v1155_v37, %v1154_v56  ;;  %v1157_v59 = vpop.f32.mrb[46].mxu0 }
 0x40d   :  { %v1158_v60 = vpop.f32.mrb[47].mxu0 }
 0x40e   :  { %v908_v61 = vadd.f32 %v1156_v58, %v1615_v8  ;;  %v1159_v62 = vadd.f32 %v1158_v60, %v1157_v59 }
 0x410   :  { %928 = vst [vmem:[%s1687_s6 + $0x70] sm:$0xff] %v908_v61  ;;  %v911_v54 = vadd.f32 %v1159_v62, %v1615_v8 }
 0x412   :  { %929 = vst [vmem:[%s1687_s6 + $0x78] sm:$0xff] %v911_v54 }

</bundles_post_ra>
